<compile_context>
chip_gen: v7x
topology: tpu7x:2x2x1
jax: 0.10.0
libtpu: 0.0.40
codegen_flags: <defaults>
</compile_context>

<pallas_src>
import functools

import jax
import jax.numpy as jnp
from jax.experimental import pallas as pl
from jax.experimental.pallas import tpu as pltpu


def _qrnn_fused_kernel(x_ref, w_ref, b_ref, c_ref, h_out_ref, c_out_ref, *,
                       kernel_size, matmul_dtype):
    """One batch tile per grid step.

    x_ref:     (BT, L, Cin)        input tile, stored dtype
    w_ref:     (K, Cin, 3*NF)      fused [z|f|o] conv weight, one slab per tap
    b_ref:     (1, 3*NF)           fused bias (f32)
    c_ref:     (BT*Lout, NF)       previous cell state (lane-dense 2-D)
    h_out_ref: (BT*Lout, NF)
    c_out_ref: (BT*Lout, NF)
    """
    bt, seq_len, cin = x_ref.shape
    m, nf = h_out_ref.shape
    lout = seq_len + 2 - kernel_size           # == m // bt

    # Load x in its stored dtype; cast at most once, right before the dots.
    x = x_ref[...]
    if x.dtype != matmul_dtype:
        x = x.astype(matmul_dtype)

    # Single leading zero timestep, concatenated along the sublane (time)
    # axis only (cheap; no cross-lane relayout, unlike a lane-axis im2col).
    x_pad = jnp.concatenate(
        [jnp.zeros((bt, 1, cin), x.dtype), x], axis=1)       # (BT, L+1, Cin)

    # K per-tap dots accumulated in f32.  Contraction depth Cin is shallow,
    # but the kernel is HBM-bound; MXU fill is irrelevant here.
    acc = jnp.zeros((m, 3 * nf), jnp.float32)
    for dk in range(kernel_size):
        xs = x_pad[:, dk:dk + lout, :].reshape(m, cin)       # sublane window
        acc = acc + jnp.dot(xs, w_ref[dk],
                            preferred_element_type=jnp.float32)
    g = acc + b_ref[...]                                     # (M, 3*NF) f32

    # Gates (f32; v5e has no bf16 VPU/EUP).  If the single EUP ever binds on
    # v5e, sigmoid(x) can be rewritten as 0.5*tanh(0.5*x)+0.5 to shave EUP ops.
    z = jnp.tanh(g[:, :nf])
    f = jax.nn.sigmoid(g[:, nf:2 * nf])
    o = jax.nn.sigmoid(g[:, 2 * nf:])
    # TODO(synk): dropout on (1 - F) is only implemented for eval mode
    # (identity); training-mode dropout would use pltpu.prng_random_bits.

    prev_c = c_ref[...].astype(jnp.float32)                  # (M, NF)
    c_new = z + f * (prev_c - z)     # == f*prev_c + (1-f)*z, one fewer VALU op
    h_new = o * c_new

    h_out_ref[...] = h_new.astype(h_out_ref.dtype)
    c_out_ref[...] = c_new.astype(c_out_ref.dtype)


def _round_up(n, a):
    return -(-n // a) * a


def _choose_batch_tile(batch, lout, row_align, target_rows=1024):
    """Pick the batch tile.

    Aims for m_tile = bt*Lout around `target_rows` rows per step, keeps
    partial (m_tile, NF) blocks sublane-aligned, divides the batch, and
    prefers >=2 grid steps (pipelining overlap + both v7x TensorCores).
    """
    candidates = []
    for bt in range(1, batch + 1):
        if batch % bt:
            continue
        if bt < batch and (bt * lout) % row_align:
            continue            # partial blocks must stay (8/16, 128) aligned
        candidates.append(bt)
    multi = [bt for bt in candidates if bt < batch and bt * lout <= target_rows]
    if multi:
        return max(multi)
    small = [bt for bt in candidates if bt * lout <= target_rows]
    if small:
        return max(small)
    return min(candidates)      # bt == batch is always a legal candidate


def _vmem_budget_bytes(bt, seq_len, cin, lout, nf, kernel_size,
                       x_itemsize, w_itemsize, state_itemsize):
    """Generous estimate of the double-buffered VMEM footprint of one step."""
    m_tile = bt * lout
    x_tile = bt * _round_up(seq_len, 8) * _round_up(cin, 128) * x_itemsize
    c_tile = _round_up(m_tile, 8) * _round_up(nf, 128) * state_itemsize
    out_tiles = 2 * c_tile
    w_bytes = (kernel_size * _round_up(cin, 8) * _round_up(3 * nf, 128)
               * w_itemsize)
    b_bytes = 8 * _round_up(3 * nf, 128) * 4
    pipelined = 2 * (x_tile + c_tile + out_tiles + w_bytes + b_bytes)
    scratch = (2 * bt * _round_up(seq_len + 1, 8) * _round_up(cin, 128) * 4
               + 2 * _round_up(m_tile, 8) * _round_up(3 * nf, 128) * 4  # acc,g
               + 5 * _round_up(m_tile, 8) * _round_up(nf, 128) * 4)     # gates
    return pipelined + scratch + (2 << 20)


def qrnn_layer_forward(x, h, c, params, *, kernel_size, batch_tile=None,
                       matmul_dtype=None, out_dtype=None,
                       donate_cell_state=False):
    """x: (B, L, Cin); h, c: (B, Lout, NF); returns (h_new, h_new, c_new).

    `h` is accepted for interface parity with the PyTorch module but is not an
    input to the QRNN cell update (same as the original semantics).

    matmul_dtype: dtype of the MXU operands (x cast in-kernel, W cast once in
      the wrapper).  Defaults to x.dtype.
    out_dtype: dtype of the h/c output HBM streams; bf16 roughly halves the
      dominant traffic.  Defaults to c.dtype (the prev_c read stream uses the
      dtype of `c` as passed by the caller).
    donate_cell_state: alias prev_c -> c_out (input_output_aliases) for call
      sites that update the cell state in place.
    """
    del h
    B, L, Cin = x.shape
    K = kernel_size
    NF = params["wz"].shape[-1]
    Lout = L + 2 - K
    assert c.shape == (B, Lout, NF), (c.shape, (B, Lout, NF))

    mm_dtype = jnp.dtype(x.dtype if matmul_dtype is None else matmul_dtype)
    o_dtype = jnp.dtype(c.dtype if out_dtype is None else out_dtype)

    # Fuse the 3 gate convs into one (K, Cin, 3*NF) weight and one (1, 3*NF)
    # f32 bias (glue, not hot path).  Tap dk of the fused weight matches the
    # in-kernel window x_pad[:, dk:dk+Lout].
    w = jnp.concatenate([params["wz"], params["wf"], params["wo"]],
                        axis=-1).astype(mm_dtype)             # (K, Cin, 3NF)
    b = jnp.concatenate([params["bz"], params["bf"], params["bo"]],
                        axis=-1).astype(jnp.float32)          # (1, 3NF)

    # Sublane alignment for partial (m_tile, NF) blocks: 16 rows if any state
    # stream is 16-bit, else 8.
    row_align = 16 if min(o_dtype.itemsize,
                          jnp.dtype(c.dtype).itemsize) < 4 else 8
    bt = (_choose_batch_tile(B, Lout, row_align) if batch_tile is None
          else batch_tile)
    assert B % bt == 0, "batch_tile must divide the batch size"
    assert bt == B or (bt * Lout) % row_align == 0, (
        "bt*Lout must be sublane-aligned for partial blocks")
    grid = (B // bt,)
    m_tile = bt * Lout

    # Lane-dense 2-D view of the cell state (contiguous -> free reshape).
    c2d = c.reshape(B * Lout, NF)

    vmem_budget = _vmem_budget_bytes(
        bt, L, Cin, Lout, NF, K, jnp.dtype(x.dtype).itemsize,
        mm_dtype.itemsize,
        max(o_dtype.itemsize, jnp.dtype(c.dtype).itemsize))
    # Floor at 16 MiB (never below stock scoped limits), cap at 64 MiB so the
    # budget is safe on v7x's smaller VMEM.
    vmem_limit = int(min(64 << 20, max(16 << 20, vmem_budget)))

    if donate_cell_state:
        assert o_dtype == jnp.dtype(c.dtype), (
            "donate_cell_state requires matching prev_c / c_out dtypes")

    kernel = functools.partial(_qrnn_fused_kernel, kernel_size=K,
                               matmul_dtype=mm_dtype)

    h2d, c2d_new = pl.pallas_call(
        kernel,
        out_shape=(
            jax.ShapeDtypeStruct((B * Lout, NF), o_dtype),
            jax.ShapeDtypeStruct((B * Lout, NF), o_dtype),
        ),
        grid_spec=pltpu.PrefetchScalarGridSpec(
            num_scalar_prefetch=0,
            grid=grid,
            in_specs=[
                # TODO(synk): with Cin << 128 the x tile is lane-padded; a
                # lane-packed x layout would shave the (small) x DMA stream.
                pl.BlockSpec((bt, L, Cin), lambda i: (i, 0, 0)),       # x
                pl.BlockSpec((K, Cin, 3 * NF), lambda i: (0, 0, 0)),   # fused W
                pl.BlockSpec((1, 3 * NF), lambda i: (0, 0)),           # fused b
                pl.BlockSpec((m_tile, NF), lambda i: (i, 0)),          # prev c
            ],
            out_specs=[
                pl.BlockSpec((m_tile, NF), lambda i: (i, 0)),          # h
                pl.BlockSpec((m_tile, NF), lambda i: (i, 0)),          # c
            ],
        ),
        compiler_params=pltpu.CompilerParams(
            dimension_semantics=("parallel",),
            vmem_limit_bytes=vmem_limit),
        input_output_aliases=({3: 1} if donate_cell_state else {}),
    )(x, w, b, c2d)

    h_new = h2d.reshape(B, Lout, NF)
    c_new = c2d_new.reshape(B, Lout, NF)
    masked_input = h_new
    return masked_input, h_new, c_new


def _reference_forward(x, h, c, params, *, kernel_size, matmul_dtype=None):
    """Pure-JAX reference mirroring the PyTorch module (eval mode)."""
    del h
    mm = jnp.dtype(x.dtype if matmul_dtype is None else matmul_dtype)
    x_pad = jnp.pad(x.astype(jnp.float32), ((0, 0), (1, 0), (0, 0)))
    L = x.shape[1]
    Lout = L + 2 - kernel_size

    def conv(w, bias):
        acc = jnp.zeros((x.shape[0], Lout, w.shape[-1]), jnp.float32)
        for dk in range(kernel_size):
            acc = acc + jnp.einsum(
                "blc,cf->blf",
                x_pad[:, dk:dk + Lout, :].astype(mm),
                w[dk].astype(mm),
                preferred_element_type=jnp.float32)
        return acc + bias[None, :, :].astype(jnp.float32)

    z = jnp.tanh(conv(params["wz"], params["bz"]))
    f = jax.nn.sigmoid(conv(params["wf"], params["bf"]))
    o = jax.nn.sigmoid(conv(params["wo"], params["bo"]))
    c_f32 = c.astype(jnp.float32)
    c_new = f * c_f32 + (1.0 - f) * z
    h_new = o * c_new
    return h_new, h_new, c_new


if __name__ == "__main__":
    # Small shapes consistent with the module's forward.  NF = 128 so gate
    # slices and h/c stores are lane-dense (unmasked vst).
    batch_size = 2
    seq_len = 8
    input_size = 16
    n_filters = 128
    kernel_size = 2                       # -> Lout == seq_len
    Lout = seq_len + 2 - kernel_size

    key = jax.random.PRNGKey(0)
    kx, kh, kc, k1, k2, k3, k4, k5, k6 = jax.random.split(key, 9)

    x = jax.random.normal(kx, (batch_size, seq_len, input_size), jnp.float32)
    h0 = jax.random.normal(kh, (batch_size, Lout, n_filters), jnp.float32)
    c0 = jax.random.normal(kc, (batch_size, Lout, n_filters), jnp.float32)

    # Deterministic parameter init.  PyTorch Conv1d weight is (NF, Cin, K); it
    # is stored here as (K, Cin, NF) for the channels-last kernel layout.
    scale = 0.1
    params = {
        "wz": scale * jax.random.normal(
            k1, (kernel_size, input_size, n_filters), jnp.float32),
        "wf": scale * jax.random.normal(
            k2, (kernel_size, input_size, n_filters), jnp.float32),
        "wo": scale * jax.random.normal(
            k3, (kernel_size, input_size, n_filters), jnp.float32),
        "bz": scale * jax.random.normal(k4, (1, n_filters), jnp.float32),
        "bf": scale * jax.random.normal(k5, (1, n_filters), jnp.float32),
        "bo": scale * jax.random.normal(k6, (1, n_filters), jnp.float32),
    }

    # ---- f32 path (exact check).  Auto batch_tile -> 2 grid steps here. ----
    out, h_new, c_new = qrnn_layer_forward(x, h0, c0, params,
                                           kernel_size=kernel_size)
    jax.block_until_ready((out, h_new, c_new))

    ref_out, ref_h, ref_c = _reference_forward(x, h0, c0, params,
                                               kernel_size=kernel_size)
    assert jnp.allclose(h_new, ref_h, atol=1e-5, rtol=1e-4)
    assert jnp.allclose(c_new, ref_c, atol=1e-5, rtol=1e-4)

    # ---- bf16 state I/O + bf16 matmul operands (v6e/v7x; loose check). ----
    c0_bf16 = c0.astype(jnp.bfloat16)
    _, h_bf16, c_bf16 = qrnn_layer_forward(
        x, h0, c0_bf16, params, kernel_size=kernel_size,
        matmul_dtype=jnp.bfloat16, out_dtype=jnp.bfloat16)
    jax.block_until_ready((h_bf16, c_bf16))

    _, ref_h_bf16, ref_c_bf16 = _reference_forward(
        x, h0, c0_bf16, params, kernel_size=kernel_size,
        matmul_dtype=jnp.bfloat16)
    assert jnp.allclose(h_bf16.astype(jnp.float32), ref_h_bf16,
                        atol=3e-2, rtol=3e-2)
    assert jnp.allclose(c_bf16.astype(jnp.float32), ref_c_bf16,
                        atol=3e-2, rtol=3e-2)

    print("KERNEL_OK")
</pallas_src>

<mosaic_0001>
module attributes {stable_mosaic.version = 11 : i64} {
  func.func @_qrnn_fused_kernel(%arg0: i32, %arg1: memref<1x8x16xf32, #tpu.memory_space<vmem>>, %arg2: memref<2x16x384xf32, #tpu.memory_space<vmem>>, %arg3: memref<1x384xf32, #tpu.memory_space<vmem>>, %arg4: memref<8x128xf32, #tpu.memory_space<vmem>>, %arg5: memref<8x128xf32, #tpu.memory_space<vmem>>, %arg6: memref<8x128xf32, #tpu.memory_space<vmem>>) attributes {dimension_semantics = [#tpu.dimension_semantics<parallel>], iteration_bounds = array<i64: 2>, scalar_prefetch = 0 : i64, scratch_operands = 0 : i64, tpu.core_type = #tpu.core_type<tc>, window_params = [{transform_indices = @transform_0, window_bounds = array<i64: 1, 8, 16>}, {pipeline_mode = #tpu.pipeline_mode<synchronous>, transform_indices = @transform_1, window_bounds = array<i64: 2, 16, 384>}, {pipeline_mode = #tpu.pipeline_mode<synchronous>, transform_indices = @transform_2, window_bounds = array<i64: 1, 384>}, {transform_indices = @transform_3, window_bounds = array<i64: 8, 128>}, {transform_indices = @transform_4, window_bounds = array<i64: 8, 128>}, {transform_indices = @transform_5, window_bounds = array<i64: 8, 128>}]} {
    %c0 = arith.constant 0 : index
    %c0_0 = arith.constant 0 : index
    %c0_1 = arith.constant 0 : index
    %0 = vector.load %arg1[%c0, %c0_0, %c0_1] : memref<1x8x16xf32, #tpu.memory_space<vmem>>, vector<1x8x16xf32>
    %cst = arith.constant 0.000000e+00 : f32
    %1 = vector.broadcast %cst : f32 to vector<1x1x16xf32>
    %2 = tpu.concatenate %1, %0 in 1 : vector<1x1x16xf32>, vector<1x8x16xf32> -> vector<1x9x16xf32>
    %cst_2 = arith.constant 0.000000e+00 : f32
    %3 = vector.broadcast %cst_2 : f32 to vector<8x384xf32>
    %4 = vector.extract_strided_slice %2 {offsets = [0, 0, 0], sizes = [1, 8, 16], strides = [1, 1, 1]} : vector<1x9x16xf32> to vector<1x8x16xf32>
    %5 = vector.shape_cast %4 : vector<1x8x16xf32> to vector<8x16xf32>
    %c0_3 = arith.constant 0 : index
    %c0_4 = arith.constant 0 : index
    %c0_5 = arith.constant 0 : index
    %6 = vector.load %arg2[%c0_3, %c0_4, %c0_5] : memref<2x16x384xf32, #tpu.memory_space<vmem>>, vector<1x16x384xf32>
    %7 = vector.shape_cast %6 : vector<1x16x384xf32> to vector<16x384xf32>
    %cst_6 = arith.constant dense<0.000000e+00> : vector<8x384xf32>
    %8 = tpu.matmul %5, %7, %cst_6 {dimension_numbers = #tpu.dot_dimension_numbers<[1], [0], [0], [1], [0, 0, 1, 1], [], []>} : vector<8x16xf32>, vector<16x384xf32>, vector<8x384xf32> -> vector<8x384xf32>
    %9 = arith.addf %3, %8 : vector<8x384xf32>
    %10 = vector.extract_strided_slice %2 {offsets = [0, 1, 0], sizes = [1, 8, 16], strides = [1, 1, 1]} : vector<1x9x16xf32> to vector<1x8x16xf32>
    %11 = vector.shape_cast %10 : vector<1x8x16xf32> to vector<8x16xf32>
    %c1 = arith.constant 1 : index
    %c0_7 = arith.constant 0 : index
    %c0_8 = arith.constant 0 : index
    %12 = vector.load %arg2[%c1, %c0_7, %c0_8] : memref<2x16x384xf32, #tpu.memory_space<vmem>>, vector<1x16x384xf32>
    %13 = vector.shape_cast %12 : vector<1x16x384xf32> to vector<16x384xf32>
    %cst_9 = arith.constant dense<0.000000e+00> : vector<8x384xf32>
    %14 = tpu.matmul %11, %13, %cst_9 {dimension_numbers = #tpu.dot_dimension_numbers<[1], [0], [0], [1], [0, 0, 1, 1], [], []>} : vector<8x16xf32>, vector<16x384xf32>, vector<8x384xf32> -> vector<8x384xf32>
    %15 = arith.addf %9, %14 : vector<8x384xf32>
    %c0_10 = arith.constant 0 : index
    %c0_11 = arith.constant 0 : index
    %16 = vector.load %arg3[%c0_10, %c0_11] : memref<1x384xf32, #tpu.memory_space<vmem>>, vector<1x384xf32>
    %17 = vector.broadcast %16 : vector<1x384xf32> to vector<8x384xf32>
    %18 = arith.addf %15, %17 : vector<8x384xf32>
    %19 = vector.extract_strided_slice %18 {offsets = [0, 0], sizes = [8, 128], strides = [1, 1]} : vector<8x384xf32> to vector<8x128xf32>
    %20 = math.tanh %19 : vector<8x128xf32>
    %21 = vector.extract_strided_slice %18 {offsets = [0, 128], sizes = [8, 128], strides = [1, 1]} : vector<8x384xf32> to vector<8x128xf32>
    %22 = arith.negf %21 : vector<8x128xf32>
    %23 = math.exp %22 : vector<8x128xf32>
    %cst_12 = arith.constant 1.000000e+00 : f32
    %24 = vector.broadcast %cst_12 : f32 to vector<8x128xf32>
    %25 = arith.addf %24, %23 : vector<8x128xf32>
    %26 = arith.divf %24, %25 : vector<8x128xf32>
    %27 = vector.extract_strided_slice %18 {offsets = [0, 256], sizes = [8, 128], strides = [1, 1]} : vector<8x384xf32> to vector<8x128xf32>
    %28 = arith.negf %27 : vector<8x128xf32>
    %29 = math.exp %28 : vector<8x128xf32>
    %cst_13 = arith.constant 1.000000e+00 : f32
    %30 = vector.broadcast %cst_13 : f32 to vector<8x128xf32>
    %31 = arith.addf %30, %29 : vector<8x128xf32>
    %32 = arith.divf %30, %31 : vector<8x128xf32>
    %c0_14 = arith.constant 0 : index
    %c0_15 = arith.constant 0 : index
    %33 = vector.load %arg4[%c0_14, %c0_15] : memref<8x128xf32, #tpu.memory_space<vmem>>, vector<8x128xf32>
    %34 = arith.subf %33, %20 : vector<8x128xf32>
    %35 = arith.mulf %26, %34 : vector<8x128xf32>
    %36 = arith.addf %20, %35 : vector<8x128xf32>
    %37 = arith.mulf %32, %36 : vector<8x128xf32>
    %c0_16 = arith.constant 0 : index
    %c0_17 = arith.constant 0 : index
    %38 = vector.load %arg5[%c0_16, %c0_17] : memref<8x128xf32, #tpu.memory_space<vmem>>, vector<8x128xf32>
    tpu.vector_store %arg5[%c0_16, %c0_17], %37 {strides = array<i32>} : memref<8x128xf32, #tpu.memory_space<vmem>>, vector<8x128xf32>,
    %c0_18 = arith.constant 0 : index
    %c0_19 = arith.constant 0 : index
    %39 = vector.load %arg6[%c0_18, %c0_19] : memref<8x128xf32, #tpu.memory_space<vmem>>, vector<8x128xf32>
    tpu.vector_store %arg6[%c0_18, %c0_19], %36 {strides = array<i32>} : memref<8x128xf32, #tpu.memory_space<vmem>>, vector<8x128xf32>,
    return
  }
  func.func @transform_0(%arg0: i32) -> (i32, i32, i32) {
    %c0_i32 = arith.constant 0 : i32
    %c0_i32_0 = arith.constant 0 : i32
    %c0_i32_1 = arith.constant 0 : i32
    return %arg0, %c0_i32, %c0_i32_0 : i32, i32, i32
  }
  func.func @transform_1(%arg0: i32) -> (i32, i32, i32) {
    %c0_i32 = arith.constant 0 : i32
    %c0_i32_0 = arith.constant 0 : i32
    %c0_i32_1 = arith.constant 0 : i32
    %c0_i32_2 = arith.constant 0 : i32
    return %c0_i32, %c0_i32_0, %c0_i32_1 : i32, i32, i32
  }
  func.func @transform_2(%arg0: i32) -> (i32, i32) {
    %c0_i32 = arith.constant 0 : i32
    %c0_i32_0 = arith.constant 0 : i32
    %c0_i32_1 = arith.constant 0 : i32
    return %c0_i32, %c0_i32_0 : i32, i32
  }
  func.func @transform_3(%arg0: i32) -> (i32, i32) {
    %c0_i32 = arith.constant 0 : i32
    %c0_i32_0 = arith.constant 0 : i32
    return %arg0, %c0_i32 : i32, i32
  }
  func.func @transform_4(%arg0: i32) -> (i32, i32) {
    %c0_i32 = arith.constant 0 : i32
    %c0_i32_0 = arith.constant 0 : i32
    return %arg0, %c0_i32 : i32, i32
  }
  func.func @transform_5(%arg0: i32) -> (i32, i32) {
    %c0_i32 = arith.constant 0 : i32
    %c0_i32_0 = arith.constant 0 : i32
    return %arg0, %c0_i32 : i32, i32
  }
}

</mosaic_0001>

<bundles_post_ra>
// kernel: tpu_custom_call.1
= control target key start
LH: loop header
LB: loop body
LE: loop exit
PB: predicated region body
PF: predicated region fallthrough
CT: control target
= control target key end

     0   :  { %s1482_s0 = inlined_call_operand.hbm [shape: f32[2,8,16], index: 0, kind: input, shape index: {}]   ;;  %s1483_s1 = inlined_call_operand.hbm [shape: f32[2,16,384], index: 1, kind: input, shape index: {}]   ;;  %s1484_s2 = inlined_call_operand.vmem [shape: f32[1,384], index: 2, kind: input, shape index: {}]   ;;  %s1485_s3 = inlined_call_operand.hbm [shape: f32[16,128], index: 3, kind: input, shape index: {}]   ;;  %s1486_s4 = inlined_call_operand.hbm [shape: f32[16,128], index: 4, kind: output, shape index: {0}]   ;;  %s1487_s5 = inlined_call_operand.hbm [shape: f32[16,128], index: 5, kind: output, shape index: {1}]  }
   0x1   :  { %1493 = sst [smem:[#allocation16_spill]] %s1482_s0 }
   0x2   :  { %11 = vsyncpa [#allocation3], 0 }
   0x3   :  { %13 = vsyncpa [#allocation3 + $0x1], 0 }
   0x4   :  { %14 = vsyncpa [#allocation6], 0 }
   0x5   :  { %15 = vsyncpa [#allocation4], 0 }
   0x6   :  { %17 = vsyncpa [#allocation4 + $0x1], 0 }
   0x7   :  { %18 = vsyncpa [#allocation10], 0 }
   0x8   :  { %20 = vsyncpa [#allocation10 + $0x1], 0  ;;  %s1195_s18 = smov 0   ;;  %s1197_s19 = smov 0  }
   0x9   :  { %s1199_s20 = smov 0   ;;  %s1201_s21 = smov 0  }
   0xa LB: > { %s1216_s22 = sadd.s32 1, %s1153_s21   ;;  %s33_s23 = sadd.s32 1, %s1149_s20  ;;  %s1153_s21 = sphi %s1201_s21, %s1512_s21   ;;  %s1149_s20 = sphi %s1199_s20, %s1511_s20   ;;  %s1145_s19 = sphi %s1197_s19, %s1510_s19   ;;  %s1141_s18 = sphi %s1195_s18, %s1509_s18  }
   0xb   : > { %s30_s24 = ssub.s32 %s1153_s21, %s1216_s22  ;;  %p40_p0 = scmp.ne.s32.totalorder %s1149_s20, %s1145_s19 }
   0xc   : > { %p31_p1 = scmp.eq.s32.totalorder %s30_s24, 0  ;;  %p41_p2 = scmp.eq.s32.totalorder %s1153_s21, 0 }
   0xd   : > { %p908_p4 = scmp.lt.s32.totalorder %s1153_s21, 2  ;;  %s206_s26 = sand.u32 1, %s1153_s21  }
   0xe   : > { %s1227_s25 = scalar_select %p31_p1, %s1149_s20, %s33_s23  }
   0xf   : > { %p42_p5 = por %p41_p2, %p40_p0  ;;  %s208_s27 = sand.u32 1, %s1149_s20  }
  0x10   : > { %s1234_s28 = sshll.u32 %s208_s27, 3  ;;  %s820_s29 = sshll.u32 %s1153_s21, 7 }
  0x11   : > { %s1494_s0 = sld [smem:[#allocation16_spill]]  ;;  %s210_s8 = scalar_lea.vmem [#allocation2], %s1234_s28 }
  0x12   : > { %s217_s9 = sshll.u32 %s210_s8, 4  ;;  %p1245_p6 = pnand %p908_p4, %p42_p5  ;;  %s1249_s9 = int_to_ptr.vmem [resolvable:$true] %s217_s9 }
  0x13   : > { %s1251_s11 = scalar_lea.sflag [#allocation3], %s206_s26 }
  0x14   : > { %p961_p8 = pneg %p1245_p6 }
  0x17   : > { %s1242_s7 = scalar_lea.hbm %s1494_s0, %s820_s29  ;;  %s964_s15 = scalar_lea.hbm %s1494_s0, 256 }
  0x18   : > { %s959_s12 = scalar_lea.hbm %s1242_s7, 128  ;;  %p965_p11 = scmp.lt.u32.totalorder %s1242_s7, %s1494_s0 }
  0x19   : > { %p960_p7 = scmp.ne.s32.totalorder %s1242_s7, %s959_s12  ;;  %p966_p12 = scmp.lt.u32.totalorder %s964_s15, %s959_s12 }
  0x1a   : > { %p968_p1 = scmp.lt.u32.totalorder %s959_s12, %s1242_s7 }
  0x1b   : > { %p962_p9 = pnand %p961_p8, %p960_p7  ;;  %p967_p13 = por %p966_p12, %p965_p11 }
  0x1d   : > { %p963_p10 = pneg %p962_p9  ;;  %p969_p2 = por %p968_p1, %p967_p13 }
  0x1f   : > { %p970_p4 = pnand %p969_p2, %p963_p10 }
  0x21   : > { %973 = shalt.err (!%p970_p4)
}
  0x22   : > { %s974_s23 = scalar_lea.vmem %s1249_s9, 128  ;;  %s1155_s24 = smov [#allocation2]  }
  0x23   : > { %p975_p5 = scmp.ne.s32.totalorder %s1249_s9, %s974_s23  ;;  %s979_s26 = sshll.u32 %s1155_s24, 4  ;;  %s980_s26 = int_to_ptr.vmem [resolvable:$false] %s979_s26 }
  0x24   : > { %s981_s27 = scalar_lea.vmem %s980_s26, 256  ;;  %p982_p3 = scmp.lt.s32.totalorder %s1249_s9, %s980_s26 }
  0x25   : > { %p977_p7 = pnand %p975_p5, %p961_p8  ;;  %p983_p11 = scmp.lt.s32.totalorder %s981_s27, %s974_s23 }
  0x27   : > { %p978_p9 = pneg %p977_p7  ;;  %p984_p12 = por %p983_p11, %p982_p3 }
  0x29   : > { %p985_p13 = pnand %p984_p12, %p978_p9 }
  0x2b   : > { %988 = shalt.err (!%p985_p13)
}
  0x2c   : > { %896 = dma.hbm_to_vmem [thread:$0]  (!%p1245_p6), %s1242_s7, 128, %s1249_s9, %s1251_s11  }
  0x2d   : > { %s1280_s30 = sadd.s32 4294967295, %s1153_s21   ;;  %s815_s6 = sadd.s32 4294967294, %s1153_s21  }
  0x2e   : > { %p46_p3 = scmp.ne.s32.totalorder %s1145_s19, %s1141_s18  ;;  %p1488_p10 = scmp.eq.s32.totalorder %s1280_s30, 0 }
  0x2f   : > { %p138_p1 = scmp.eq.s32.totalorder %s1280_s30, 1  ;;  %p144_p2 = scmp.eq.s32.totalorder %s815_s6, 1 }
  0x30   : > { %p1289_p4 = por %p1488_p10, %p46_p3  ;;  %p816_p5 = scmp.ge.s32.totalorder %s1153_s21, 1 }
  0x31   : > { %p1297_p7 = por %p138_p1, %p40_p0  ;;  %p1301_p9 = por %p144_p2, %p46_p3 }
  0x32   : > { %s1496_s8 = scalar_select %p1289_p4, 1, 0 }
  0x33   : > { %s1497_s7 = scalar_select %p1297_p7, 1, 0 }
  0x34   : > { %s1498_s9 = scalar_select %p1301_p9, 1, 0 }
  0x35   : > { %p177_p11 = scmp.lt.s32.totalorder %s1153_s21, 3  ;;  %s1156_s13 = smov [#allocation5]  }
  0x36   : > { %s189_s14 = sshll.u32 %s1156_s13, 4  ;;  %s1315_s17 = scalar_lea.hbm %s1485_s3, %s820_s29  ;;  %s1320_s14 = int_to_ptr.vmem [resolvable:$true] %s189_s14 }
  0x37   : > { %p1306_p12 = pnand %p816_p5, %p177_p11  ;;  %s228_s23 = scalar_lea.vmem [#allocation7], %s1234_s28 }
  0x38   : > { %s235_s24 = sshll.u32 %s228_s23, 4  ;;  %s989_s27 = scalar_lea.hbm %s1315_s17, 128  ;;  %s236_s24 = int_to_ptr.vmem [resolvable:$true] %s235_s24 }
  0x39   : > { %s1499_s12 = scalar_select %p1306_p12, 1, 0 }
  0x3a   : > { %p889_p0 = pneg %p1306_p12  ;;  %p990_p3 = scmp.ne.s32.totalorder %s1315_s17, %s989_s27 }
  0x3b   : > { %s994_s13 = scalar_lea.hbm %s1485_s3, 256  ;;  %p995_p5 = scmp.lt.u32.totalorder %s1315_s17, %s1485_s3 }
  0x3c   : > { %p1324_p13 = pnand %p889_p0, %p1488_p10  ;;  %p992_p1 = pnand %p990_p3, %p961_p8 }
  0x3d   : > { %p996_p11 = scmp.lt.u32.totalorder %s994_s13, %s989_s27  ;;  %p998_p0 = scmp.lt.u32.totalorder %s989_s27, %s1315_s17 }
  0x3e   : > { %s1500_s26 = scalar_select %p1324_p13, 1, 0 }
  0x3f   : > { %p993_p2 = pneg %p992_p1  ;;  %p997_p9 = por %p996_p11, %p995_p5 }
  0x41   : > { %p999_p10 = por %p998_p0, %p997_p9 }
  0x43   : > { %p1000_p7 = pnand %p999_p10, %p993_p2 }
  0x45   : > { %1003 = shalt.err (!%p1000_p7)
}
  0x46   : > { %s1004_s16 = scalar_lea.vmem %s236_s24, 128  ;;  %s1157_s23 = smov [#allocation7]  }
  0x47   : > { %p1005_p4 = scmp.ne.s32.totalorder %s236_s24, %s1004_s16  ;;  %s1009_s29 = sshll.u32 %s1157_s23, 4  ;;  %s1010_s29 = int_to_ptr.vmem [resolvable:$false] %s1009_s29 }
  0x48   : > { %s1011_s6 = scalar_lea.vmem %s1010_s29, 256  ;;  %p1012_p12 = scmp.lt.s32.totalorder %s236_s24, %s1010_s29 }
  0x49   : > { %p1007_p3 = pnand %p1005_p4, %p961_p8  ;;  %p1013_p13 = scmp.lt.s32.totalorder %s1011_s6, %s1004_s16 }
  0x4b   : > { %p1008_p1 = pneg %p1007_p3  ;;  %p1014_p5 = por %p1013_p13, %p1012_p12 }
  0x4d   : > { %p1015_p11 = pnand %p1014_p5, %p1008_p1 }
  0x4f   : > { %1018 = shalt.err (!%p1015_p11)
}
  0x50   : > { %899 = dma.hbm_to_vmem [thread:$0]  (!%p1245_p6), %s1315_s17, 128, %s236_s24, %s1251_s11  }
  0x51   : > { %s1019_s28 = scalar_lea.hbm %s1483_s1, 1536  ;;  %p1501_p10 = scmp.ne.s32.totalorder %s1500_s26, 0 }
  0x52   : > { %p1020_p8 = scmp.ne.s32.totalorder %s1483_s1, %s1019_s28  ;;  %p1026_p12 = scmp.lt.u32.totalorder %s1019_s28, %s1483_s1 }
  0x53   : > { %p1021_p4 = pneg %p1501_p10 }
  0x55   : > { %p1022_p7 = pnand %p1021_p4, %p1020_p8 }
  0x57   : > { %p1023_p9 = pneg %p1022_p7 }
  0x59   : > { %p1028_p13 = pnand %p1026_p12, %p1023_p9 }
  0x5b   : > { %1031 = shalt.err (!%p1028_p13)
}
  0x5c   : > { %s1032_s10 = scalar_lea.vmem %s1320_s14, 1536  ;;  %p1040_p3 = scmp.lt.s32.totalorder %s1320_s14, %s1320_s14 }
  0x5d   : > { %p1033_p6 = scmp.ne.s32.totalorder %s1320_s14, %s1032_s10  ;;  %p1041_p1 = scmp.lt.s32.totalorder %s1032_s10, %s1032_s10 }
  0x5f   : > { %p1035_p2 = pnand %p1033_p6, %p1021_p4  ;;  %p1042_p5 = por %p1041_p1, %p1040_p3 }
  0x61   : > { %p1036_p0 = pneg %p1035_p2 }
  0x63   : > { %p1043_p11 = pnand %p1042_p5, %p1036_p0 }
  0x65   : > { %1046 = shalt.err (!%p1043_p11)
}
  0x66   : > { %s1158_s0 = smov 384   ;;  %s1159_s11 = smov 24  }
  0x67   : > { %892 = dma.hbm_to_vmem [thread:$0]  (!%p1501_p10), %s1483_s1, 1536, %s1320_s14, [#allocation6], %s1158_s0, %s1158_s0, %s1159_s11  }
  0x68   : > { %p1502_p8 = scmp.ne.s32.totalorder %s1499_s12, 0 }
  0x69   : > { %s246_s29 = sand.u32 (!%p1502_p8), 1, %s1280_s30   ;;  %s1373_s6 = sand.u32 (!%p1502_p8), 1, %s1145_s19  }
  0x6a   : > { %244 = sbr.rel (%p1502_p8) target bundleno = 419 (0x1a3), region = 36  ;;  %s1376_s27 = sshll.u32 (!%p1502_p8), %s1373_s6, 3 }
  0x6b   : > { %s247_s13 = scalar_lea.sflag (!%p1502_p8), [#allocation3], %s246_s29  ;;  %s250_s28 = scalar_lea.vmem (!%p1502_p8), [#allocation2], %s1376_s27 }
  0x6c   : > { %p1503_p4 = scmp.ne.s32.totalorder (!%p1502_p8), %s1496_s8, 0 }
  0x71   : > { %1120 = dma.done.wait (%p1503_p4), %s247_s13, 128  }
  0x72   : > { %1122 = vsyncadd (%p1503_p4), %s247_s13, 4294967168  ;;  %p1504_p10 = scmp.eq.s32.totalorder %s1280_s30, 0 }
  0x74   : > { %1124 = dma.done.wait (%p1504_p10), [#allocation6], 1536   ;;  %p1505_p7 = pmov %p1504_p10 }
  0x75   : > { %s263_s12 = scalar_lea.vmem [#allocation7], %s1376_s27 }
  0x76   : > { %1126 = vsyncadd (%p1505_p7), [#allocation6], 4294965760 }
  0x77   : > { %1128 = dma.done.wait (%p1503_p4), %s247_s13, 128  }
  0x78   : > { %1130 = vsyncadd (%p1503_p4), %s247_s13, 4294967168  ;;  %v1160_v0 = vmov 0.0   ;;  %v1161_v1 = vmov 0.0|0.0   ;;  %vm1162_vm0 = vmmov 0   ;;  %v314_v2 = vld [vmem:[#allocation5 + $0x38] sm:$0xff]  ;;  %v317_v3 = vld [vmem:[#allocation5 + $0x50] sm:$0xff]  ;;  %v613_v26 = vlaneseq }
  0x79   : > { %391 = vmatprep.mubr.f32.mxu0 %v1160_v0  ;;  %865 = vmatprep.subr.bf16.mxu1 %v1161_v1  ;;  %v313_v4 = vld [vmem:[#allocation5 + $0x30] sm:$0xff]  ;;  %v861_v5 = vpack.c.bf16 %v317_v3, %v314_v2  ;;  %v316_v6 = vld [vmem:[#allocation5 + $0x48] sm:$0xff]  ;;  %vm304_vm1 = vcmask 1040384   ;;  %v310_v11 = vld [vmem:[#allocation5 + $0x20] sm:$0xff]  ;;  %vm320_vm2 = vcmask 1046528   ;;  %vm324_vm3 = vcmask 130048  }
  0x7a   : > { %851 = vmatprep.mubr.msk.f32.mxu1 %vm1162_vm0, %v1160_v0  ;;  %v300_v7 = vld [vmem:[%s250_s28] sm:$0xff]  ;;  %v307_v8 = vld [vmem:[#allocation5 + $0x8] sm:$0xff]  ;;  %v863_v9 = vpack.c.bf16 %v316_v6, %v313_v4  ;;  %v315_v12 = vld [vmem:[#allocation5 + $0x40] sm:$0xff]  ;;  %v614_v27 = vshrl.u32 %v613_v26, 7  ;;  %s837_s26 = sshll.u32 %s1280_s30, 7  ;;  %s299_s15 = scalar_lea.vmem [#allocation9], %s1376_s27 }
  0x7b   : > { %v302_v10 = vrot.slane %v300_v7, 7  ;;  %v318_v13 = vld [vmem:[#allocation5 + $0x58] sm:$0xff]  ;;  %862 = vmatprep.subr.bf16.mxu0 %v861_v5  ;;  %v868_v14 = vpack.c.bf16 %v310_v11, %v307_v8  ;;  %v306_v16 = vld [vmem:[#allocation5] sm:$0xff]  ;;  %v308_v18 = vld [vmem:[#allocation5 + $0x10] sm:$0xff]  ;;  %s683_s16 = sshll.u32 %s299_s15, 4  ;;  %s292_s23 = scalar_lea.vmem [#allocation8], %s1376_s27  ;;  %s1409_s16 = int_to_ptr.vmem [resolvable:$true] %s683_s16 }
  0x7c   : > { %v866_v15 = vpack.c.bf16 %v318_v13, %v315_v12  ;;  %v309_v17 = vld [vmem:[#allocation5 + $0x18] sm:$0xff]  ;;  %864 = vmatpush1.bf16.msra.mxu0 %v863_v9  ;;  %v311_v21 = vld [vmem:[#allocation5 + $0x28] sm:$0xff]  ;;  %v623_v28 = vsub.s32 2, %v614_v27  ;;  %v611_v30 = vld [vmem:[%s1484_s2] sm:$0x7]  ;;  %v619_v32 = vsub.s32 1, %v614_v27  ;;  %s1407_s17 = scalar_lea.hbm %s1487_s5, %s837_s26  ;;  %s1414_s29 = scalar_lea.hbm %s1486_s4, %s837_s26 }
  0x7d   : > { %v305_v19 = vsel %vm304_vm1, 0.0, %v302_v10  ;;  %v322_v20 = vrot.slane %v302_v10, 1  ;;  %869 = vmatprep.subr.bf16.mxu0 %v868_v14  ;;  %v870_v23 = vpack.c.bf16 %v309_v17, %v306_v16  ;;  %v873_v24 = vpack.c.bf16 %v311_v21, %v308_v18  ;;  %v644_v52 = vld [vmem:[%s263_s12] sm:$0xff]  ;;  %s670_s10 = sshll.u32 %s292_s23, 4  ;;  %s657_s13 = scalar_lea.sflag [#allocation10], %s1373_s6  ;;  %s1416_s10 = int_to_ptr.vmem [resolvable:$true] %s670_s10 }
  0x7e   : > { %v321_v22 = vrot.slane %v305_v19, 1  ;;  %867 = vmatpush3.bf16.msra.mxu1 %v866_v15  ;;  %v624_v33 = vrot.slane %v611_v30, %v623_v28  ;;  %v620_v37 = vrot.slane %v611_v30, %v619_v32  ;;  %v615_v43 = vsub.s32 0, %v614_v27  ;;  %s1047_s28 = scalar_lea.vmem %s1409_s16, 128  ;;  %p1506_p12 = scmp.ne.s32.totalorder %s1497_s7, 0 }
  0x7f   : > { %872 = vmatprep.subr.bf16.mxu1 %v1161_v1  ;;  %p1048_p9 = scmp.ne.s32.totalorder %s1409_s16, %s1047_s28  ;;  %s1163_s12 = smov [#allocation9]  }
  0x80   : > { %v323_v25 = vsel %vm320_vm2, %v321_v22, %v322_v20  ;;  %v616_v45 = vrot.slane %v611_v30, %v615_v43  ;;  %s1051_s8 = sshll.u32 %s1163_s12, 4  ;;  %s1052_s8 = int_to_ptr.vmem [resolvable:$false] %s1051_s8 }
  0x81   : > { %829 = vmatmul.mubr.msk.f32.vlgmr.msra.gmra.mrb[0].mxu0 %vm324_vm3, %v323_v25  ;;  %852 = vmatmul.mubr.msk.f32.vlgmr.msra.gmra.mrb[0].mxu1 %vm324_vm3, %v323_v25  ;;  %p1049_p13 = pnand %p1048_p9, %p1506_p12  ;;  %s1053_s14 = scalar_lea.vmem %s1052_s8, 256 }
  0x82   : > { %871 = vmatpush1.bf16.msra.mxu0 %v870_v23  ;;  %874 = vmatpush3.bf16.msra.mxu1 %v873_v24  ;;  %p1054_p2 = scmp.lt.s32.totalorder %s1409_s16, %s1052_s8  ;;  %p1055_p0 = scmp.lt.s32.totalorder %s1053_s14, %s1047_s28 }
  0x83   : > { %534 = vmatprep.mubr.f32.mxu0 %v1160_v0  ;;  %858 = vmatprep.mubr.msk.f32.mxu1 %vm1162_vm0, %v1160_v0  ;;  %p1050_p6 = pneg %p1049_p13 }
  0x84   : > { %p1056_p3 = por %p1055_p0, %p1054_p2 }
  0x85   : > { %859 = vmatmul.mubr.msk.f32.vlgmr.msra.gmra.mrb[2].mxu1 %vm324_vm3, %v305_v19 }
  0x86   : > { %p1057_p1 = pnand %p1056_p3, %p1050_p6 }
  0x89   : > { %831 = vmatmul.mubr.msk.f32.vlgmr.msra.gmra.mrb[0].mxu0 %vm324_vm3, %v305_v19 }
 0x154   : > { %v464_v29 = vpop.f32.mrb[0].mxu1 }
 0x155   : > { %v853_v31 = vpop.f32.mrb[1].mxu1 }
 0x158   : > { %v607_v34 = vpop.f32.mrb[2].mxu1 }
 0x159   : > { %v608_v35 = vadd.f32 %v607_v34, %v464_v29  ;;  %v860_v36 = vpop.f32.mrb[3].mxu1 }
 0x15b   : > { %v630_v38 = vadd.f32 %v624_v33, %v608_v35 }
 0x15c   : > { %v536_v39 = vpop.f32.mrb[0].mxu0 }
 0x15d   : > { %v834_v40 = vmul.f32 -1.442695, %v630_v38  ;;  %v538_v41 = vpop.f32.mrb[1].mxu0  ;;  %v628_v46 = vadd.f32 %v616_v45, %v536_v39 }
 0x15e   : > { %v629_v42 = vadd.f32 %v620_v37, %v538_v41 }
 0x15f   : > { %949 = vpow2.f32 %v834_v40 }
 0x160   : > { %v833_v44 = vmul.f32 -1.442695, %v629_v42 }
 0x162   : > { %951 = vpow2.f32 %v833_v44 }
 0x163   : > { %953 = vtanh.f32 %v628_v46 }
 0x169   : > { %v950_v47 = vpop.eup %949 }
 0x16a   : > { %v641_v50 = vadd.f32 1.0, %v950_v47 }
 0x16c   : > { %v952_v48 = vpop.eup %951 }
 0x16d   : > { %v635_v49 = vadd.f32 1.0, %v952_v48  ;;  %v954_v51 = vpop.eup %953 }
 0x16e   : > { %v645_v53 = vsub.f32 %v644_v52, %v954_v51 }
 0x16f   : > { %955 = vrcp.f32 %v635_v49 }
 0x170   : > { %957 = vrcp.f32 %v641_v50 }
 0x179   : > { %v956_v54 = vpop.eup %955 }
 0x17a   : > { %v646_v55 = vmul.f32 %v956_v54, %v645_v53  ;;  %v958_v57 = vpop.eup %957 }
 0x17c   : > { %v647_v56 = vadd.f32 %v954_v51, %v646_v55 }
 0x17e   : > { %v648_v58 = vmul.f32 %v958_v57, %v647_v56  ;;  %650 = vst [vmem:[%s299_s15] sm:$0xff] %v647_v56 }
 0x17f   : > { %1060 = shalt.err (!%p1057_p1)
}
 0x180   : > { %s1061_s26 = scalar_lea.hbm %s1407_s17, 128  ;;  %s1065_s11 = scalar_lea.hbm %s1487_s5, 256 }
 0x181   : > { %p1062_p5 = scmp.ne.s32.totalorder %s1407_s17, %s1061_s26  ;;  %p1066_p4 = scmp.lt.u32.totalorder %s1407_s17, %s1487_s5 }
 0x182   : > { %p1067_p10 = scmp.lt.u32.totalorder %s1065_s11, %s1061_s26  ;;  %p1069_p9 = scmp.lt.u32.totalorder %s1061_s26, %s1407_s17 }
 0x183   : > { %p1063_p11 = pnand %p1062_p5, %p1506_p12 }
 0x184   : > { %p1068_p7 = por %p1067_p10, %p1066_p4 }
 0x185   : > { %p1064_p8 = pneg %p1063_p11 }
 0x186   : > { %p1070_p13 = por %p1069_p9, %p1068_p7 }
 0x188   : > { %p1071_p6 = pnand %p1070_p13, %p1064_p8 }
 0x18a   : > { %1074 = shalt.err (!%p1071_p6)
}
 0x18b   : > { %886 = dma.vmem_to_hbm [thread:$0]  (%p1506_p12), %s1409_s16, 128, %s1407_s17, %s657_s13   ;;  %649 = vst [vmem:[%s292_s23] sm:$0xff] %v648_v58 }
 0x18c   : > { %s652_s28 = scalar_lea.sflag [#allocation4], %s1373_s6  ;;  %s1075_s12 = scalar_lea.vmem %s1416_s10, 128 }
 0x18d   : > { %p1076_p2 = scmp.ne.s32.totalorder %s1416_s10, %s1075_s12  ;;  %s1164_s8 = smov [#allocation8]  }
 0x18e   : > { %s1079_s14 = sshll.u32 %s1164_s8, 4  ;;  %s1080_s14 = int_to_ptr.vmem [resolvable:$false] %s1079_s14 }
 0x18f   : > { %p1077_p0 = pnand %p1076_p2, %p1506_p12  ;;  %s1081_s26 = scalar_lea.vmem %s1080_s14, 256 }
 0x190   : > { %p1082_p1 = scmp.lt.s32.totalorder %s1416_s10, %s1080_s14  ;;  %p1083_p5 = scmp.lt.s32.totalorder %s1081_s26, %s1075_s12 }
 0x191   : > { %p1078_p3 = pneg %p1077_p0 }
 0x192   : > { %p1084_p11 = por %p1083_p5, %p1082_p1 }
 0x194   : > { %p1085_p8 = pnand %p1084_p11, %p1078_p3 }
 0x196   : > { %1088 = shalt.err (!%p1085_p8)
}
 0x197   : > { %s1089_s6 = scalar_lea.hbm %s1414_s29, 128  ;;  %s1093_s23 = scalar_lea.hbm %s1486_s4, 256 }
 0x198   : > { %p1090_p4 = scmp.ne.s32.totalorder %s1414_s29, %s1089_s6  ;;  %p1094_p9 = scmp.lt.u32.totalorder %s1414_s29, %s1486_s4 }
 0x199   : > { %p1095_p13 = scmp.lt.u32.totalorder %s1093_s23, %s1089_s6  ;;  %p1097_p2 = scmp.lt.u32.totalorder %s1089_s6, %s1414_s29 }
 0x19a   : > { %p1091_p10 = pnand %p1090_p4, %p1506_p12 }
 0x19b   : > { %p1096_p6 = por %p1095_p13, %p1094_p9 }
 0x19c   : > { %p1092_p7 = pneg %p1091_p10 }
 0x19d   : > { %p1098_p0 = por %p1097_p2, %p1096_p6 }
 0x19f   : > { %p1099_p3 = pnand %p1098_p0, %p1092_p7 }
 0x1a1   : > { %1102 = shalt.err (!%p1099_p3)
}
 0x1a2   : > { %885 = dma.vmem_to_hbm [thread:$0]  (%p1506_p12), %s1416_s10, 128, %s1414_s29, %s652_s28  }
 0x1a3 PF: > { %s695_s15 = sand.u32 1, %s1141_s18   ;;  %p1507_p1 = scmp.ne.s32.totalorder %s1498_s9, 0 }
 0x1a4   : > { %p1508_p5 = scmp.ge.s32.totalorder %s1153_s21, 2  ;;  %s696_s0 = scalar_lea.sflag [#allocation4], %s695_s15 }
 0x1a6   : > { %p901_p11 = pnand %p1508_p5, %p1507_p1 }
 0x1a8   : > { %1132 = dma.done.wait (!%p901_p11), %s696_s0, 128  }
 0x1a9   : > { %1134 = vsyncadd (!%p901_p11), %s696_s0, 4294967168  ;;  %s705_s11 = scalar_lea.sflag [#allocation10], %s695_s15 }
 0x1aa   : > { %1136 = dma.done.wait (!%p901_p11), %s705_s11, 128  }
 0x1ab   : > { %1138 = vsyncadd (!%p901_p11), %s705_s11, 4294967168  ;;  %p23_p12 = scmp.ge.s32.totalorder %s1216_s22, 4   ;;  %s1509_s18 = smov %s1145_s19 }
 0x1ac   : > { %s1510_s19 = smov %s1149_s20  ;;  %s1511_s20 = smov %s1227_s25 }
 0x1ad   : > { %s1512_s21 = smov %s1216_s22  ;;  %25 = sbr.rel (!%p23_p12) target bundleno = 10 (0xa), region = 114 }
 0x1b4   :  { %710 = vsyncpa [#allocation3], 1 }
 0x1b5   :  { %712 = vsyncpa [#allocation3 + $0x1], 1 }
 0x1b6   :  { %713 = vsyncpa [#allocation6], 1 }
 0x1b7   :  { %714 = vsyncpa [#allocation4], 1 }
 0x1b8   :  { %716 = vsyncpa [#allocation4 + $0x1], 1 }
 0x1b9   :  { %717 = vsyncpa [#allocation10], 1 }
 0x1ba   :  { %719 = vsyncpa [#allocation10 + $0x1], 1 }

</bundles_post_ra>
